<compile_context>
chip_gen: v5e
topology: v5e:2x2
jax: 0.10.0
libtpu: 0.0.40
codegen_flags: <defaults>
</compile_context>

<pallas_src>
import functools

import jax
import jax.numpy as jnp
from jax.experimental import pallas as pl
from jax.experimental.pallas import tpu as pltpu


def _cdiv(a, b):
    return -(-a // b)


def _round_up(a, b):
    return _cdiv(a, b) * b


def _block_diag(w, n):
    """(din, dout) -> (n*din, n*dout) with n copies of w on the block diagonal."""
    din, dout = w.shape
    eye = jnp.eye(n, dtype=w.dtype)
    return (eye[:, None, :, None] * w[None, :, None, :]).reshape(n * din, n * dout)


def pack_params(w1, b1, w2, b2, *, pack=4):
    """Pack PyTorch-layout Linear params into lane-dense block-diagonal replicas.

    Call ONCE (at parameter creation / update time), NOT per forward — this is
    the hoisted version of the packing that previously ran on every call.
    w1: (D_h, D_in), b1: (D_h,), w2: (D_out, D_h), b2: (D_out,)   (torch layout)
    """
    w1p = _block_diag(w1.T, pack)            # (pack*D_in, pack*D_h)  e.g. (128, 256)
    w2p = _block_diag(w2.T, pack)            # (pack*D_h, pack*D_out) e.g. (256, 128)
    b1p = jnp.tile(b1, pack)[None, :]        # (1, pack*D_h)
    b2p = jnp.tile(b2, pack)[None, :]        # (1, pack*D_out)
    return w1p, b1p, w2p, b2p


def _ckpt_block_kernel(x_ref, w1_ref, b1_ref, w2_ref, b2_ref, o_ref):
    # fc1 (packed, lane-dense): (tbp, 128) @ (128, 256) on the MXU, f32 accumulation.
    h = jnp.dot(x_ref[...], w1_ref[...], preferred_element_type=jnp.float32)
    # bias + ReLU in f32 on the VPU (v5e has no bf16 VPU/EUP -> keep epilogue f32).
    h = jnp.maximum(h + b1_ref[...].astype(jnp.float32), 0.0)
    # fc2 (packed): (tbp, 256) @ (256, 128) on the MXU, f32 accumulation.
    y = jnp.dot(h.astype(w2_ref.dtype), w2_ref[...], preferred_element_type=jnp.float32)
    o_ref[...] = (y + b2_ref[...].astype(jnp.float32)).astype(o_ref.dtype)


def checkpoint_block_forward(x, w1p, b1p, w2p, b2p, *, block_rows=8192):
    """Fused forward of Linear(D_in->D_h) -> ReLU -> Linear(D_h->D_out).

    x : (B, D_in); w1p/b1p/w2p/b2p: outputs of pack_params() (packed ONCE).
    block_rows = logical batch rows per grid step (sweep 8k-32k for large B).
    Returns (B, D_out) in x.dtype.
    """
    B, d_in = x.shape
    pack = w1p.shape[0] // d_in
    d_h = w1p.shape[1] // pack
    d_out = w2p.shape[1] // pack

    # Pad ONLY up to a multiple of `pack` (<= pack-1 rows, usually a no-op), so
    # the (B, d_in) -> (B/pack, pack*d_in) reshape is a free row-major merge.
    pad = (-B) % pack
    if pad:
        x = jnp.pad(x, ((0, pad), (0, 0)))
    Bp = B + pad
    packed_rows = Bp // pack
    xp = x.reshape(packed_rows, pack * d_in)          # lane-dense input slab, no copy

    # Row-tile sizing: big tiles amortize the ~0.35us per-grid-step overhead.
    tbp = max(block_rows // pack, 8)
    tbp = min(tbp, _round_up(packed_rows, 8))
    tbp = _round_up(tbp, 8)                           # sublane multiple of 8
    n_tiles = _cdiv(packed_rows, tbp)                 # ragged last block handled by Pallas

    itemsize_x = jnp.dtype(x.dtype).itemsize
    itemsize_w = jnp.dtype(w1p.dtype).itemsize
    x_tile_b = tbp * pack * d_in * itemsize_x
    y_tile_b = tbp * pack * d_out * itemsize_x
    h_tile_b = tbp * pack * d_h * 4                   # f32 intermediate
    w_bytes = (w1p.size + b1p.size + w2p.size + b2p.size) * itemsize_w

    # VMEM budget: double-buffered x/y tiles + (double-buffered) weights + f32 h,
    # plus headroom; capped at ~75% of physical VMEM (v7x only has 64 MiB).
    vmem_need = 2 * (x_tile_b + y_tile_b) + 2 * w_bytes + h_tile_b + (4 << 20)
    try:
        vmem_cap = int(0.75 * pltpu.get_tpu_info().vmem_capacity_bytes)
    except Exception:
        vmem_cap = 48 << 20
    vmem_limit = int(min(max(32 << 20, vmem_need), vmem_cap))

    # Accurate cost estimate: count the pack^2-replicated block-diagonal FLOPs
    # actually issued to the MXU and the packed bytes actually streamed.
    cost = pl.CostEstimate(
        flops=2 * n_tiles * tbp * (pack * d_in * pack * d_h + pack * d_h * pack * d_out),
        transcendentals=0,
        bytes_accessed=(packed_rows * pack * (d_in + d_out)) * itemsize_x + w_bytes,
    )

    out_p = pl.pallas_call(
        _ckpt_block_kernel,
        out_shape=jax.ShapeDtypeStruct((packed_rows, pack * d_out), x.dtype),
        grid=(n_tiles,),
        in_specs=[
            # batch-tiled, lane-dense (128-wide) input
            pl.BlockSpec((tbp, pack * d_in), lambda i: (i, 0)),
            # weights/biases: constant block index -> DMA'd once, VMEM-resident
            pl.BlockSpec(w1p.shape, lambda i: (0, 0)),
            pl.BlockSpec(b1p.shape, lambda i: (0, 0)),
            pl.BlockSpec(w2p.shape, lambda i: (0, 0)),
            pl.BlockSpec(b2p.shape, lambda i: (0, 0)),
        ],
        out_specs=pl.BlockSpec((tbp, pack * d_out), lambda i: (i, 0)),
        compiler_params=pltpu.CompilerParams(
            dimension_semantics=("parallel",),        # megacore / v7x 2-TC batch split
            vmem_limit_bytes=vmem_limit,
        ),
        cost_estimate=cost,
    )(xp, w1p, b1p, w2p, b2p)

    out = out_p.reshape(Bp, d_out)                    # free row-major split
    if pad:
        out = out[:B]                                 # only when B % pack != 0
    return out


def init_params(key, d_in, d_h, d_out, dtype=jnp.float32):
    """Deterministic init mimicking torch.nn.Linear defaults (uniform +-1/sqrt(fan_in))."""
    k1, k2, k3, k4 = jax.random.split(key, 4)
    lim1 = 1.0 / jnp.sqrt(d_in)
    lim2 = 1.0 / jnp.sqrt(d_h)
    # PyTorch stores weight as (out, in); keep that convention.
    w1 = jax.random.uniform(k1, (d_h, d_in), dtype, -lim1, lim1)
    b1 = jax.random.uniform(k2, (d_h,), dtype, -lim1, lim1)
    w2 = jax.random.uniform(k3, (d_out, d_h), dtype, -lim2, lim2)
    b2 = jax.random.uniform(k4, (d_out,), dtype, -lim2, lim2)
    return w1, b1, w2, b2


if __name__ == "__main__":
    key = jax.random.PRNGKey(0)
    D_IN, D_H, D_OUT = 32, 64, 32
    PACK = 128 // D_IN

    kx, kp = jax.random.split(key)
    w1, b1, w2, b2 = init_params(kp, D_IN, D_H, D_OUT)

    # Pack params ONCE (hoisted out of the forward path).
    packed_f32 = pack_params(w1, b1, w2, b2, pack=PACK)

    fwd = jax.jit(checkpoint_block_forward, static_argnames=("block_rows",))

    # ---- Test 1: f32, B not a multiple of pack AND not a multiple of the tile:
    #      exercises the <=3-row pad, the ragged last grid block and the tail slice.
    B1 = 1003
    x1 = jax.random.normal(kx, (B1, D_IN), jnp.float32)
    out1 = jax.block_until_ready(fwd(x1, *packed_f32, block_rows=512))
    ref1 = jnp.maximum(x1 @ w1.T + b1, 0.0) @ w2.T + b2
    assert out1.shape == (B1, D_OUT)
    assert jnp.allclose(out1, ref1, atol=1e-3, rtol=1e-3), "f32 ragged path mismatch"

    # ---- Test 2: f32, B a multiple of pack and of the tile: fully copy-free path
    #      (no pad, no output slice), multi-tile pipelined grid.
    B2 = 1024
    x2 = jax.random.normal(jax.random.fold_in(kx, 1), (B2, D_IN), jnp.float32)
    out2 = jax.block_until_ready(fwd(x2, *packed_f32, block_rows=512))
    ref2 = jnp.maximum(x2 @ w1.T + b1, 0.0) @ w2.T + b2
    assert out2.shape == (B2, D_OUT)
    assert jnp.allclose(out2, ref2, atol=1e-3, rtol=1e-3), "f32 aligned path mismatch"

    # ---- Test 3: bf16 x / weights (halves HBM traffic on every generation;
    #      f32 MXU accumulation and f32 epilogue inside the kernel).
    x_bf = x2.astype(jnp.bfloat16)
    packed_bf16 = tuple(p.astype(jnp.bfloat16) for p in packed_f32)
    out_bf = jax.block_until_ready(fwd(x_bf, *packed_bf16, block_rows=512))
    # Reference that mirrors the kernel's bf16 dataflow (bf16 inputs, f32 accum,
    # bf16 h between the matmuls), compared in f32 with bf16-appropriate tolerance.
    xb = x_bf.astype(jnp.float32)
    w1b = packed_bf16[0].astype(jnp.float32)[:D_IN, :D_H]          # top-left block == w1.T
    b1b = packed_bf16[1].astype(jnp.float32)[0, :D_H]
    w2b = packed_bf16[2].astype(jnp.float32)[:D_H, :D_OUT]         # top-left block == w2.T
    b2b = packed_bf16[3].astype(jnp.float32)[0, :D_OUT]
    h_ref = jnp.maximum(xb @ w1b + b1b, 0.0).astype(jnp.bfloat16).astype(jnp.float32)
    ref_bf = h_ref @ w2b + b2b
    assert out_bf.dtype == jnp.bfloat16 and out_bf.shape == (B2, D_OUT)
    assert jnp.allclose(out_bf.astype(jnp.float32), ref_bf, atol=3e-2, rtol=3e-2), \
        "bf16 path mismatch"

    # TODO(synk): gradient checkpointing (torch.utils.checkpoint) only affects the
    # backward recompute policy; the forward here is the plain sequential block.
    print("KERNEL_OK")
</pallas_src>

<mosaic_0001>
module attributes {stable_mosaic.version = 11 : i64} {
  func.func @_ckpt_block_kernel(%arg0: i32, %arg1: memref<128x128xf32, #tpu.memory_space<vmem>>, %arg2: memref<128x256xf32, #tpu.memory_space<vmem>>, %arg3: memref<1x256xf32, #tpu.memory_space<vmem>>, %arg4: memref<256x128xf32, #tpu.memory_space<vmem>>, %arg5: memref<1x128xf32, #tpu.memory_space<vmem>>, %arg6: memref<128x128xf32, #tpu.memory_space<vmem>>) attributes {dimension_semantics = [#tpu.dimension_semantics<parallel>], iteration_bounds = array<i64: 2>, scalar_prefetch = 0 : i64, scratch_operands = 0 : i64, tpu.core_type = #tpu.core_type<tc>, window_params = [{transform_indices = @transform_0, window_bounds = array<i64: 128, 128>}, {pipeline_mode = #tpu.pipeline_mode<synchronous>, transform_indices = @transform_1, window_bounds = array<i64: 128, 256>}, {pipeline_mode = #tpu.pipeline_mode<synchronous>, transform_indices = @transform_2, window_bounds = array<i64: 1, 256>}, {pipeline_mode = #tpu.pipeline_mode<synchronous>, transform_indices = @transform_3, window_bounds = array<i64: 256, 128>}, {pipeline_mode = #tpu.pipeline_mode<synchronous>, transform_indices = @transform_4, window_bounds = array<i64: 1, 128>}, {transform_indices = @transform_5, window_bounds = array<i64: 128, 128>}]} {
    %c0 = arith.constant 0 : index
    %c0_0 = arith.constant 0 : index
    %0 = vector.load %arg1[%c0, %c0_0] : memref<128x128xf32, #tpu.memory_space<vmem>>, vector<128x128xf32>
    %c0_1 = arith.constant 0 : index
    %c0_2 = arith.constant 0 : index
    %1 = vector.load %arg2[%c0_1, %c0_2] : memref<128x256xf32, #tpu.memory_space<vmem>>, vector<128x256xf32>
    %cst = arith.constant dense<0.000000e+00> : vector<128x256xf32>
    %2 = tpu.matmul %0, %1, %cst {dimension_numbers = #tpu.dot_dimension_numbers<[1], [0], [0], [1], [0, 0, 1, 1], [], []>} : vector<128x128xf32>, vector<128x256xf32>, vector<128x256xf32> -> vector<128x256xf32>
    %c0_3 = arith.constant 0 : index
    %c0_4 = arith.constant 0 : index
    %3 = vector.load %arg3[%c0_3, %c0_4] : memref<1x256xf32, #tpu.memory_space<vmem>>, vector<1x256xf32>
    %4 = vector.broadcast %3 : vector<1x256xf32> to vector<128x256xf32>
    %5 = arith.addf %2, %4 : vector<128x256xf32>
    %cst_5 = arith.constant 0.000000e+00 : f32
    %6 = vector.broadcast %cst_5 : f32 to vector<128x256xf32>
    %7 = arith.maximumf %5, %6 : vector<128x256xf32>
    %c0_6 = arith.constant 0 : index
    %c0_7 = arith.constant 0 : index
    %8 = vector.load %arg4[%c0_6, %c0_7] : memref<256x128xf32, #tpu.memory_space<vmem>>, vector<256x128xf32>
    %cst_8 = arith.constant dense<0.000000e+00> : vector<128x128xf32>
    %9 = tpu.matmul %7, %8, %cst_8 {dimension_numbers = #tpu.dot_dimension_numbers<[1], [0], [0], [1], [0, 0, 1, 1], [], []>} : vector<128x256xf32>, vector<256x128xf32>, vector<128x128xf32> -> vector<128x128xf32>
    %c0_9 = arith.constant 0 : index
    %c0_10 = arith.constant 0 : index
    %10 = vector.load %arg5[%c0_9, %c0_10] : memref<1x128xf32, #tpu.memory_space<vmem>>, vector<1x128xf32>
    %11 = vector.broadcast %10 : vector<1x128xf32> to vector<128x128xf32>
    %12 = arith.addf %9, %11 : vector<128x128xf32>
    %c0_11 = arith.constant 0 : index
    %c0_12 = arith.constant 0 : index
    %13 = vector.load %arg6[%c0_11, %c0_12] : memref<128x128xf32, #tpu.memory_space<vmem>>, vector<128x128xf32>
    tpu.vector_store %arg6[%c0_11, %c0_12], %12 {strides = array<i32>} : memref<128x128xf32, #tpu.memory_space<vmem>>, vector<128x128xf32>,
    return
  }
  func.func @transform_0(%arg0: i32) -> (i32, i32) {
    %c0_i32 = arith.constant 0 : i32
    %c0_i32_0 = arith.constant 0 : i32
    return %arg0, %c0_i32 : i32, i32
  }
  func.func @transform_1(%arg0: i32) -> (i32, i32) {
    %c0_i32 = arith.constant 0 : i32
    %c0_i32_0 = arith.constant 0 : i32
    %c0_i32_1 = arith.constant 0 : i32
    return %c0_i32, %c0_i32_0 : i32, i32
  }
  func.func @transform_2(%arg0: i32) -> (i32, i32) {
    %c0_i32 = arith.constant 0 : i32
    %c0_i32_0 = arith.constant 0 : i32
    %c0_i32_1 = arith.constant 0 : i32
    return %c0_i32, %c0_i32_0 : i32, i32
  }
  func.func @transform_3(%arg0: i32) -> (i32, i32) {
    %c0_i32 = arith.constant 0 : i32
    %c0_i32_0 = arith.constant 0 : i32
    %c0_i32_1 = arith.constant 0 : i32
    return %c0_i32, %c0_i32_0 : i32, i32
  }
  func.func @transform_4(%arg0: i32) -> (i32, i32) {
    %c0_i32 = arith.constant 0 : i32
    %c0_i32_0 = arith.constant 0 : i32
    %c0_i32_1 = arith.constant 0 : i32
    return %c0_i32, %c0_i32_0 : i32, i32
  }
  func.func @transform_5(%arg0: i32) -> (i32, i32) {
    %c0_i32 = arith.constant 0 : i32
    %c0_i32_0 = arith.constant 0 : i32
    return %arg0, %c0_i32 : i32, i32
  }
}

</mosaic_0001>

<bundles_post_ra>
// kernel: checkpoint_block_forward.1
= control target key start
LH: loop header
LB: loop body
LE: loop exit
PB: predicated region body
PF: predicated region fallthrough
CT: control target
= control target key end

     0   :  { %s740_s18 = smov 0   ;;  %s1054_s0 = inlined_call_operand.vmem [shape: f32[251,128], index: 0, kind: input, shape index: {}]   ;;  %s1055_s1 = inlined_call_operand.vmem [shape: f32[128,256], index: 1, kind: input, shape index: {}]   ;;  %s1056_s2 = inlined_call_operand.vmem [shape: f32[1,256], index: 2, kind: input, shape index: {}]   ;;  %s1057_s3 = inlined_call_operand.vmem [shape: f32[256,128], index: 3, kind: input, shape index: {}]   ;;  %s1058_s4 = inlined_call_operand.vmem [shape: f32[1,128], index: 4, kind: input, shape index: {}]   ;;  %s1059_s5 = inlined_call_operand.vmem [shape: f32[251,128], index: 5, kind: output, shape index: {}]  }
   0x1 LB: > { %s682_s19 = sadd.s32 4294967295, %s708_s18   ;;  %p686_p0 = scmp.ge.s32.totalorder %s708_s18, 1  ;;  %s708_s18 = sphi %s740_s18, %s15_s18  }
   0x2   : > { %p188_p1 = scmp.lt.s32.totalorder %s708_s18, 3 }
   0x4   : > { %p189_p2 = pnand %p686_p0, %p188_p1 }
   0x5   : > { %s687_s29 = sshll.u32 (!%p189_p2), %s682_s19, 4 }
   0x6   : > { %192 = sbr.rel (%p189_p2) target bundleno = 430 (0x1ae), region = 40  ;;  %p217_p3 = scmp.lt.s32.totalorder (!%p189_p2), %s687_s29, 31 }
   0xb   : > { %v274_v0 = vld [vmem:[%s1055_s1 + $0xf0] sm:$0xff]  ;;  %v272_v1 = vld [vmem:[%s1055_s1 + $0xe0] sm:$0xff]  ;;  %v275_v2 = vld [vmem:[%s1055_s1 + $0xf8] sm:$0xff]  ;;  %s1061_s29 = smov (!%p217_p3, %s687_s29), 31 }
   0xc   : > { %282 = vmatpush.msra.mxu0 %v274_v0  ;;  %347 = vmatpush.msra.mxu1 %v275_v2  ;;  %v273_v3 = vld [vmem:[%s1055_s1 + $0xe8] sm:$0xff]  ;;  %v270_v4 = vld [vmem:[%s1055_s1 + $0xd0] sm:$0xff]  ;;  %v271_v5 = vld [vmem:[%s1055_s1 + $0xd8] sm:$0xff]  ;;  %s688_s26 = sshll.u32 %s1061_s29, 3 }
   0xd   : > { %v268_v6 = vld [vmem:[%s1055_s1 + $0xc0] sm:$0xff]  ;;  %v269_v7 = vld [vmem:[%s1055_s1 + $0xc8] sm:$0xff]  ;;  %v266_v8 = vld [vmem:[%s1055_s1 + $0xb0] sm:$0xff]  ;;  %s848_s19 = scalar_lea.vmem %s1054_s0, %s688_s26  ;;  %s1018_s25 = scalar_lea.vmem %s1059_s5, %s688_s26 }
   0xe   : > { %283 = vmatpush.msra.mxu0 %v272_v1  ;;  %348 = vmatpush.msra.mxu1 %v273_v3  ;;  %v267_v9 = vld [vmem:[%s1055_s1 + $0xb8] sm:$0xff]  ;;  %v264_v10 = vld [vmem:[%s1055_s1 + $0xa0] sm:$0xff]  ;;  %v265_v11 = vld [vmem:[%s1055_s1 + $0xa8] sm:$0xff] }
   0xf   : > { %v262_v12 = vld [vmem:[%s1055_s1 + $0x90] sm:$0xff]  ;;  %v263_v13 = vld [vmem:[%s1055_s1 + $0x98] sm:$0xff]  ;;  %v260_v14 = vld [vmem:[%s1055_s1 + $0x80] sm:$0xff] }
  0x10   : > { %284 = vmatpush.msra.mxu0 %v270_v4  ;;  %349 = vmatpush.msra.mxu1 %v271_v5  ;;  %v261_v15 = vld [vmem:[%s1055_s1 + $0x88] sm:$0xff]  ;;  %v258_v16 = vld [vmem:[%s1055_s1 + $0x70] sm:$0xff]  ;;  %v259_v17 = vld [vmem:[%s1055_s1 + $0x78] sm:$0xff] }
  0x11   : > { %v256_v18 = vld [vmem:[%s1055_s1 + $0x60] sm:$0xff]  ;;  %v257_v19 = vld [vmem:[%s1055_s1 + $0x68] sm:$0xff]  ;;  %v254_v20 = vld [vmem:[%s1055_s1 + $0x50] sm:$0xff] }
  0x12   : > { %285 = vmatpush.msra.mxu0 %v268_v6  ;;  %350 = vmatpush.msra.mxu1 %v269_v7  ;;  %v255_v21 = vld [vmem:[%s1055_s1 + $0x58] sm:$0xff]  ;;  %v252_v22 = vld [vmem:[%s1055_s1 + $0x40] sm:$0xff]  ;;  %v253_v23 = vld [vmem:[%s1055_s1 + $0x48] sm:$0xff] }
  0x13   : > { %v250_v24 = vld [vmem:[%s1055_s1 + $0x30] sm:$0xff]  ;;  %v251_v25 = vld [vmem:[%s1055_s1 + $0x38] sm:$0xff]  ;;  %v248_v26 = vld [vmem:[%s1055_s1 + $0x20] sm:$0xff] }
  0x14   : > { %286 = vmatpush.msra.mxu0 %v266_v8  ;;  %351 = vmatpush.msra.mxu1 %v267_v9  ;;  %v249_v27 = vld [vmem:[%s1055_s1 + $0x28] sm:$0xff]  ;;  %v246_v28 = vld [vmem:[%s1055_s1 + $0x10] sm:$0xff]  ;;  %v247_v29 = vld [vmem:[%s1055_s1 + $0x18] sm:$0xff] }
  0x15   : > { %v244_v30 = vld [vmem:[%s1055_s1] sm:$0xff]  ;;  %v245_v31 = vld [vmem:[%s1055_s1 + $0x8] sm:$0xff]  ;;  %v230_v34 = vld [vmem:[%s848_s19 + $0x10] sm:$0xff] }
  0x16   : > { %287 = vmatpush.msra.mxu0 %v264_v10  ;;  %352 = vmatpush.msra.mxu1 %v265_v11  ;;  %v228_v32 = vld [vmem:[%s848_s19] sm:$0xff]  ;;  %v229_v33 = vld [vmem:[%s848_s19 + $0x8] sm:$0xff]  ;;  %v231_v35 = vld [vmem:[%s848_s19 + $0x18] sm:$0xff] }
  0x17   : > { %v232_v36 = vld [vmem:[%s848_s19 + $0x20] sm:$0xff]  ;;  %v233_v37 = vld [vmem:[%s848_s19 + $0x28] sm:$0xff]  ;;  %v234_v38 = vld [vmem:[%s848_s19 + $0x30] sm:$0xff] }
  0x18   : > { %288 = vmatpush.msra.mxu0 %v262_v12  ;;  %353 = vmatpush.msra.mxu1 %v263_v13  ;;  %v235_v39 = vld [vmem:[%s848_s19 + $0x38] sm:$0xff]  ;;  %v236_v40 = vld [vmem:[%s848_s19 + $0x40] sm:$0xff]  ;;  %v458_v42 = vld [vmem:[%s1057_s3 + $0x70] sm:$0xff] }
  0x19   : > { %v459_v41 = vld [vmem:[%s1057_s3 + $0x78] sm:$0xff]  ;;  %v474_v44 = vld [vmem:[%s1057_s3 + $0xf0] sm:$0xff]  ;;  %v457_v45 = vld [vmem:[%s1057_s3 + $0x68] sm:$0xff] }
  0x1a   : > { %289 = vmatpush.msra.mxu0 %v260_v14  ;;  %354 = vmatpush.msra.mxu1 %v261_v15  ;;  %v475_v43 = vld [vmem:[%s1057_s3 + $0xf8] sm:$0xff]  ;;  %v237_v46 = vld [vmem:[%s848_s19 + $0x48] sm:$0xff]  ;;  %v456_v47 = vld [vmem:[%s1057_s3 + $0x60] sm:$0xff] }
  0x1b   : > { %480 = vmatpush.msra.mxu2 %v459_v41  ;;  %545 = vmatpush.msra.mxu3 %v475_v43  ;;  %v473_v48 = vld [vmem:[%s1057_s3 + $0xe8] sm:$0xff]  ;;  %v455_v49 = vld [vmem:[%s1057_s3 + $0x58] sm:$0xff]  ;;  %v472_v50 = vld [vmem:[%s1057_s3 + $0xe0] sm:$0xff] }
  0x1c   : > { %290 = vmatpush.msra.mxu0 %v258_v16  ;;  %355 = vmatpush.msra.mxu1 %v259_v17  ;;  %v454_v51 = vld [vmem:[%s1057_s3 + $0x50] sm:$0xff]  ;;  %v471_v52 = vld [vmem:[%s1057_s3 + $0xd8] sm:$0xff]  ;;  %v453_v53 = vld [vmem:[%s1057_s3 + $0x48] sm:$0xff] }
  0x1d   : > { %481 = vmatpush.msra.mxu2 %v458_v42  ;;  %546 = vmatpush.msra.mxu3 %v474_v44  ;;  %v470_v54 = vld [vmem:[%s1057_s3 + $0xd0] sm:$0xff]  ;;  %v452_v56 = vld [vmem:[%s1057_s3 + $0x40] sm:$0xff]  ;;  %v469_v57 = vld [vmem:[%s1057_s3 + $0xc8] sm:$0xff] }
  0x1e   : > { %291 = vmatpush.msra.mxu0 %v256_v18  ;;  %356 = vmatpush.msra.mxu1 %v257_v19  ;;  %v238_v55 = vld [vmem:[%s848_s19 + $0x50] sm:$0xff]  ;;  %v451_v58 = vld [vmem:[%s1057_s3 + $0x38] sm:$0xff]  ;;  %v468_v59 = vld [vmem:[%s1057_s3 + $0xc0] sm:$0xff] }
  0x1f   : > { %482 = vmatpush.msra.mxu2 %v457_v45  ;;  %547 = vmatpush.msra.mxu3 %v473_v48  ;;  %v450_v60 = vld [vmem:[%s1057_s3 + $0x30] sm:$0xff]  ;;  %v467_v61 = vld [vmem:[%s1057_s3 + $0xb8] sm:$0xff]  ;;  %v449_v62 = vld [vmem:[%s1057_s3 + $0x28] sm:$0xff] }
  0x20   : > { %292 = vmatpush.msra.mxu0 %v254_v20  ;;  %357 = vmatpush.msra.mxu1 %v255_v21  ;;  %v466_v63 = vld [vmem:[%s1057_s3 + $0xb0] sm:$0xff]  ;;  %v239_v0 = vld [vmem:[%s848_s19 + $0x58] sm:$0xff]  ;;  %v448_v1 = vld [vmem:[%s1057_s3 + $0x20] sm:$0xff] }
  0x21   : > { %483 = vmatpush.msra.mxu2 %v456_v47  ;;  %548 = vmatpush.msra.mxu3 %v472_v50  ;;  %v465_v2 = vld [vmem:[%s1057_s3 + $0xa8] sm:$0xff]  ;;  %v447_v3 = vld [vmem:[%s1057_s3 + $0x18] sm:$0xff]  ;;  %v464_v4 = vld [vmem:[%s1057_s3 + $0xa0] sm:$0xff] }
  0x22   : > { %293 = vmatpush.msra.mxu0 %v252_v22  ;;  %358 = vmatpush.msra.mxu1 %v253_v23  ;;  %v446_v5 = vld [vmem:[%s1057_s3 + $0x10] sm:$0xff]  ;;  %v463_v6 = vld [vmem:[%s1057_s3 + $0x98] sm:$0xff]  ;;  %v240_v7 = vld [vmem:[%s848_s19 + $0x60] sm:$0xff] }
  0x23   : > { %484 = vmatpush.msra.mxu2 %v455_v49  ;;  %549 = vmatpush.msra.mxu3 %v471_v52  ;;  %v445_v8 = vld [vmem:[%s1057_s3 + $0x8] sm:$0xff]  ;;  %v462_v9 = vld [vmem:[%s1057_s3 + $0x90] sm:$0xff]  ;;  %v444_v10 = vld [vmem:[%s1057_s3] sm:$0xff] }
  0x24   : > { %294 = vmatpush.msra.mxu0 %v250_v24  ;;  %359 = vmatpush.msra.mxu1 %v251_v25  ;;  %v461_v11 = vld [vmem:[%s1057_s3 + $0x88] sm:$0xff]  ;;  %v460_v12 = vld [vmem:[%s1057_s3 + $0x80] sm:$0xff]  ;;  %v242_v14 = vld [vmem:[%s848_s19 + $0x70] sm:$0xff] }
  0x25   : > { %485 = vmatpush.msra.mxu2 %v454_v51  ;;  %550 = vmatpush.msra.mxu3 %v470_v54  ;;  %v241_v13 = vld [vmem:[%s848_s19 + $0x68] sm:$0xff]  ;;  %v243_v15 = vld [vmem:[%s848_s19 + $0x78] sm:$0xff]  ;;  %v276_v16 = vld [vmem:[%s1056_s2] sm:$0x3] }
  0x26   : > { %295 = vmatpush.msra.mxu0 %v248_v26  ;;  %360 = vmatpush.msra.mxu1 %v249_v27  ;;  %v971_v17 = vperm.slane %v276_v16, 0  ;;  %v973_v18 = vperm.slane %v276_v16, 1 }
  0x27   : > { %486 = vmatpush.msra.mxu2 %v453_v53  ;;  %551 = vmatpush.msra.mxu3 %v469_v57 }
  0x28   : > { %296 = vmatpush.msra.mxu0 %v246_v28  ;;  %361 = vmatpush.msra.mxu1 %v247_v29 }
  0x29   : > { %487 = vmatpush.msra.mxu2 %v452_v56  ;;  %552 = vmatpush.msra.mxu3 %v468_v59 }
  0x2a   : > { %297 = vmatpush.msra.mxu0 %v244_v30  ;;  %362 = vmatpush.msra.mxu1 %v245_v31 }
  0x2b   : > { %298 = vmatmul.f32.vlgmr.msra.gmra.mxu0 %v228_v32  ;;  %363 = vmatmul.f32.vlgmr.msra.gmra.mxu1 %v228_v32 }
  0x2c   : > { %488 = vmatpush.msra.mxu2 %v451_v58  ;;  %553 = vmatpush.msra.mxu3 %v467_v61 }
  0x2e   : > { %489 = vmatpush.msra.mxu2 %v450_v60  ;;  %554 = vmatpush.msra.mxu3 %v466_v63 }
  0x30   : > { %490 = vmatpush.msra.mxu2 %v449_v62  ;;  %555 = vmatpush.msra.mxu3 %v465_v2 }
  0x32   : > { %491 = vmatpush.msra.mxu2 %v448_v1  ;;  %556 = vmatpush.msra.mxu3 %v464_v4 }
  0x33   : > { %301 = vmatmul.f32.gmra.mxu0 %v229_v33  ;;  %366 = vmatmul.f32.gmra.mxu1 %v229_v33 }
  0x34   : > { %492 = vmatpush.msra.mxu2 %v447_v3  ;;  %557 = vmatpush.msra.mxu3 %v463_v6 }
  0x36   : > { %493 = vmatpush.msra.mxu2 %v446_v5  ;;  %558 = vmatpush.msra.mxu3 %v462_v9 }
  0x38   : > { %494 = vmatpush.msra.mxu2 %v445_v8  ;;  %559 = vmatpush.msra.mxu3 %v461_v11 }
  0x3a   : > { %495 = vmatpush.msra.mxu2 %v444_v10  ;;  %560 = vmatpush.msra.mxu3 %v460_v12 }
  0x3b   : > { %304 = vmatmul.f32.gmra.mxu0 %v230_v34  ;;  %369 = vmatmul.f32.gmra.mxu1 %v230_v34 }
  0x43   : > { %307 = vmatmul.f32.gmra.mxu0 %v231_v35  ;;  %372 = vmatmul.f32.gmra.mxu1 %v231_v35 }
  0x4b   : > { %310 = vmatmul.f32.gmra.mxu0 %v232_v36  ;;  %375 = vmatmul.f32.gmra.mxu1 %v232_v36 }
  0x53   : > { %313 = vmatmul.f32.gmra.mxu0 %v233_v37  ;;  %378 = vmatmul.f32.gmra.mxu1 %v233_v37 }
  0x5b   : > { %316 = vmatmul.f32.gmra.mxu0 %v234_v38  ;;  %381 = vmatmul.f32.gmra.mxu1 %v234_v38 }
  0x63   : > { %319 = vmatmul.f32.gmra.mxu0 %v235_v39  ;;  %384 = vmatmul.f32.gmra.mxu1 %v235_v39 }
  0x6b   : > { %322 = vmatmul.f32.gmra.mxu0 %v236_v40  ;;  %387 = vmatmul.f32.gmra.mxu1 %v236_v40 }
  0x73   : > { %325 = vmatmul.f32.gmra.mxu0 %v237_v46  ;;  %390 = vmatmul.f32.gmra.mxu1 %v237_v46 }
  0x7b   : > { %328 = vmatmul.f32.gmra.mxu0 %v238_v55  ;;  %393 = vmatmul.f32.gmra.mxu1 %v238_v55 }
  0x83   : > { %331 = vmatmul.f32.gmra.mxu0 %v239_v0  ;;  %396 = vmatmul.f32.gmra.mxu1 %v239_v0 }
  0x8b   : > { %334 = vmatmul.f32.gmra.mxu0 %v240_v7  ;;  %399 = vmatmul.f32.gmra.mxu1 %v240_v7 }
  0x93   : > { %337 = vmatmul.f32.gmra.mxu0 %v241_v13  ;;  %402 = vmatmul.f32.gmra.mxu1 %v241_v13 }
  0x9b   : > { %340 = vmatmul.f32.gmra.mxu0 %v242_v14  ;;  %405 = vmatmul.f32.gmra.mxu1 %v242_v14 }
  0xa3   : > { %343 = vmatmul.f32.gmra.mxu0 %v243_v15  ;;  %408 = vmatmul.f32.gmra.mxu1 %v243_v15 }
  0xa8   : > { %v299_v19 = vpop.f32.mrf.mxu0  ;;  %v364_v20 = vpop.f32.mrf.mxu1 }
  0xa9   : > { %v300_v21 = vadd.f32 %v299_v19, %v971_v17  ;;  %v365_v22 = vadd.f32 %v364_v20, %v973_v18 }
  0xab   : > { %v412_v23 = vmax.f32 %v300_v21, 0.0  ;;  %v413_v24 = vmax.f32 %v365_v22, 0.0 }
  0xad   : > { %496 = vmatmul.f32.vlgmr.msra.gmra.mxu2 %v412_v23  ;;  %561 = vmatmul.f32.vlgmr.msra.gmra.mxu3 %v413_v24 }
  0xb0   : > { %v302_v25 = vpop.f32.mrf.mxu0  ;;  %v367_v26 = vpop.f32.mrf.mxu1 }
  0xb1   : > { %v303_v27 = vadd.f32 %v302_v25, %v971_v17  ;;  %v368_v28 = vadd.f32 %v367_v26, %v973_v18 }
  0xb3   : > { %v414_v29 = vmax.f32 %v303_v27, 0.0  ;;  %v415_v30 = vmax.f32 %v368_v28, 0.0 }
  0xb5   : > { %499 = vmatmul.f32.gmra.mxu2 %v414_v29  ;;  %564 = vmatmul.f32.gmra.mxu3 %v415_v30 }
  0xb8   : > { %v305_v31 = vpop.f32.mrf.mxu0  ;;  %v370_v32 = vpop.f32.mrf.mxu1 }
  0xb9   : > { %v306_v33 = vadd.f32 %v305_v31, %v971_v17  ;;  %v371_v34 = vadd.f32 %v370_v32, %v973_v18 }
  0xbb   : > { %v416_v35 = vmax.f32 %v306_v33, 0.0  ;;  %v417_v36 = vmax.f32 %v371_v34, 0.0 }
  0xbd   : > { %502 = vmatmul.f32.gmra.mxu2 %v416_v35  ;;  %567 = vmatmul.f32.gmra.mxu3 %v417_v36 }
  0xc0   : > { %v308_v37 = vpop.f32.mrf.mxu0  ;;  %v373_v38 = vpop.f32.mrf.mxu1 }
  0xc1   : > { %v309_v39 = vadd.f32 %v308_v37, %v971_v17  ;;  %v374_v40 = vadd.f32 %v373_v38, %v973_v18 }
  0xc3   : > { %v418_v41 = vmax.f32 %v309_v39, 0.0  ;;  %v419_v42 = vmax.f32 %v374_v40, 0.0 }
  0xc5   : > { %505 = vmatmul.f32.gmra.mxu2 %v418_v41  ;;  %570 = vmatmul.f32.gmra.mxu3 %v419_v42 }
  0xc8   : > { %v311_v43 = vpop.f32.mrf.mxu0  ;;  %v376_v44 = vpop.f32.mrf.mxu1 }
  0xc9   : > { %v312_v45 = vadd.f32 %v311_v43, %v971_v17  ;;  %v377_v46 = vadd.f32 %v376_v44, %v973_v18 }
  0xcb   : > { %v420_v47 = vmax.f32 %v312_v45, 0.0  ;;  %v421_v48 = vmax.f32 %v377_v46, 0.0 }
  0xcd   : > { %508 = vmatmul.f32.gmra.mxu2 %v420_v47  ;;  %573 = vmatmul.f32.gmra.mxu3 %v421_v48 }
  0xd0   : > { %v314_v49 = vpop.f32.mrf.mxu0  ;;  %v379_v50 = vpop.f32.mrf.mxu1 }
  0xd1   : > { %v315_v51 = vadd.f32 %v314_v49, %v971_v17  ;;  %v380_v52 = vadd.f32 %v379_v50, %v973_v18 }
  0xd3   : > { %v422_v53 = vmax.f32 %v315_v51, 0.0  ;;  %v423_v54 = vmax.f32 %v380_v52, 0.0 }
  0xd5   : > { %511 = vmatmul.f32.gmra.mxu2 %v422_v53  ;;  %576 = vmatmul.f32.gmra.mxu3 %v423_v54  ;;  %v1010_v53 = vld [vmem:[%s1058_s4] ss:$0 sm:$0xff] }
  0xd8   : > { %v317_v55 = vpop.f32.mrf.mxu0  ;;  %v382_v56 = vpop.f32.mrf.mxu1 }
  0xd9   : > { %v318_v57 = vadd.f32 %v317_v55, %v971_v17  ;;  %v383_v58 = vadd.f32 %v382_v56, %v973_v18 }
  0xdb   : > { %v424_v59 = vmax.f32 %v318_v57, 0.0  ;;  %v425_v60 = vmax.f32 %v383_v58, 0.0 }
  0xdd   : > { %514 = vmatmul.f32.gmra.mxu2 %v424_v59  ;;  %579 = vmatmul.f32.gmra.mxu3 %v425_v60 }
  0xe0   : > { %v320_v61 = vpop.f32.mrf.mxu0  ;;  %v385_v62 = vpop.f32.mrf.mxu1 }
  0xe1   : > { %v321_v63 = vadd.f32 %v320_v61, %v971_v17  ;;  %v386_v0 = vadd.f32 %v385_v62, %v973_v18 }
  0xe3   : > { %v426_v1 = vmax.f32 %v321_v63, 0.0  ;;  %v427_v2 = vmax.f32 %v386_v0, 0.0 }
  0xe5   : > { %517 = vmatmul.f32.gmra.mxu2 %v426_v1  ;;  %582 = vmatmul.f32.gmra.mxu3 %v427_v2 }
  0xe8   : > { %v323_v3 = vpop.f32.mrf.mxu0  ;;  %v388_v4 = vpop.f32.mrf.mxu1 }
  0xe9   : > { %v324_v5 = vadd.f32 %v323_v3, %v971_v17  ;;  %v389_v6 = vadd.f32 %v388_v4, %v973_v18 }
  0xeb   : > { %v428_v7 = vmax.f32 %v324_v5, 0.0  ;;  %v429_v8 = vmax.f32 %v389_v6, 0.0 }
  0xed   : > { %520 = vmatmul.f32.gmra.mxu2 %v428_v7  ;;  %585 = vmatmul.f32.gmra.mxu3 %v429_v8 }
  0xf0   : > { %v326_v9 = vpop.f32.mrf.mxu0  ;;  %v391_v10 = vpop.f32.mrf.mxu1 }
  0xf1   : > { %v327_v11 = vadd.f32 %v326_v9, %v971_v17  ;;  %v392_v12 = vadd.f32 %v391_v10, %v973_v18 }
  0xf3   : > { %v430_v13 = vmax.f32 %v327_v11, 0.0  ;;  %v431_v14 = vmax.f32 %v392_v12, 0.0 }
  0xf5   : > { %523 = vmatmul.f32.gmra.mxu2 %v430_v13  ;;  %588 = vmatmul.f32.gmra.mxu3 %v431_v14 }
  0xf8   : > { %v329_v15 = vpop.f32.mrf.mxu0  ;;  %v394_v16 = vpop.f32.mrf.mxu1 }
  0xf9   : > { %v330_v19 = vadd.f32 %v329_v15, %v971_v17  ;;  %v395_v20 = vadd.f32 %v394_v16, %v973_v18 }
  0xfb   : > { %v432_v21 = vmax.f32 %v330_v19, 0.0  ;;  %v433_v22 = vmax.f32 %v395_v20, 0.0 }
  0xfd   : > { %526 = vmatmul.f32.gmra.mxu2 %v432_v21  ;;  %591 = vmatmul.f32.gmra.mxu3 %v433_v22 }
 0x100   : > { %v332_v23 = vpop.f32.mrf.mxu0  ;;  %v397_v24 = vpop.f32.mrf.mxu1 }
 0x101   : > { %v333_v25 = vadd.f32 %v332_v23, %v971_v17  ;;  %v398_v26 = vadd.f32 %v397_v24, %v973_v18 }
 0x103   : > { %v434_v27 = vmax.f32 %v333_v25, 0.0  ;;  %v435_v28 = vmax.f32 %v398_v26, 0.0 }
 0x105   : > { %529 = vmatmul.f32.gmra.mxu2 %v434_v27  ;;  %594 = vmatmul.f32.gmra.mxu3 %v435_v28 }
 0x108   : > { %v335_v29 = vpop.f32.mrf.mxu0  ;;  %v400_v30 = vpop.f32.mrf.mxu1 }
 0x109   : > { %v336_v31 = vadd.f32 %v335_v29, %v971_v17  ;;  %v401_v32 = vadd.f32 %v400_v30, %v973_v18 }
 0x10b   : > { %v436_v33 = vmax.f32 %v336_v31, 0.0  ;;  %v437_v34 = vmax.f32 %v401_v32, 0.0 }
 0x10d   : > { %532 = vmatmul.f32.gmra.mxu2 %v436_v33  ;;  %597 = vmatmul.f32.gmra.mxu3 %v437_v34 }
 0x110   : > { %v338_v35 = vpop.f32.mrf.mxu0  ;;  %v403_v36 = vpop.f32.mrf.mxu1 }
 0x111   : > { %v339_v37 = vadd.f32 %v338_v35, %v971_v17  ;;  %v404_v38 = vadd.f32 %v403_v36, %v973_v18 }
 0x113   : > { %v438_v39 = vmax.f32 %v339_v37, 0.0  ;;  %v439_v40 = vmax.f32 %v404_v38, 0.0 }
 0x115   : > { %535 = vmatmul.f32.gmra.mxu2 %v438_v39  ;;  %600 = vmatmul.f32.gmra.mxu3 %v439_v40 }
 0x118   : > { %v341_v41 = vpop.f32.mrf.mxu0  ;;  %v406_v42 = vpop.f32.mrf.mxu1 }
 0x119   : > { %v342_v43 = vadd.f32 %v341_v41, %v971_v17  ;;  %v407_v44 = vadd.f32 %v406_v42, %v973_v18 }
 0x11b   : > { %v440_v45 = vmax.f32 %v342_v43, 0.0  ;;  %v441_v46 = vmax.f32 %v407_v44, 0.0 }
 0x11d   : > { %538 = vmatmul.f32.gmra.mxu2 %v440_v45  ;;  %603 = vmatmul.f32.gmra.mxu3 %v441_v46 }
 0x120   : > { %v344_v47 = vpop.f32.mrf.mxu0  ;;  %v409_v48 = vpop.f32.mrf.mxu1 }
 0x121   : > { %v345_v49 = vadd.f32 %v344_v47, %v971_v17  ;;  %v410_v50 = vadd.f32 %v409_v48, %v973_v18 }
 0x123   : > { %v442_v51 = vmax.f32 %v345_v49, 0.0  ;;  %v443_v52 = vmax.f32 %v410_v50, 0.0 }
 0x125   : > { %541 = vmatmul.f32.gmra.mxu2 %v442_v51  ;;  %606 = vmatmul.f32.gmra.mxu3 %v443_v52 }
 0x130   : > { %v497_v54 = vpop.f32.mrf.mxu2  ;;  %v562_v55 = vpop.f32.mrf.mxu3 }
 0x131   : > { %v498_v56 = vadd.f32 %v1010_v53, %v497_v54 }
 0x133   : > { %v563_v17 = vadd.f32 %v562_v55, %v498_v56 }
 0x135   : > { %610 = vst [vmem:[%s1018_s25] sm:$0xff] %v563_v17 }
 0x138   : > { %v500_v18 = vpop.f32.mrf.mxu2  ;;  %v565_v57 = vpop.f32.mrf.mxu3 }
 0x139   : > { %v501_v58 = vadd.f32 %v1010_v53, %v500_v18 }
 0x13b   : > { %v566_v59 = vadd.f32 %v565_v57, %v501_v58 }
 0x13d   : > { %611 = vst [vmem:[%s1018_s25 + $0x8] sm:$0xff] %v566_v59 }
 0x140   : > { %v503_v60 = vpop.f32.mrf.mxu2  ;;  %v568_v61 = vpop.f32.mrf.mxu3 }
 0x141   : > { %v504_v62 = vadd.f32 %v1010_v53, %v503_v60 }
 0x143   : > { %v569_v63 = vadd.f32 %v568_v61, %v504_v62 }
 0x145   : > { %612 = vst [vmem:[%s1018_s25 + $0x10] sm:$0xff] %v569_v63 }
 0x148   : > { %v506_v0 = vpop.f32.mrf.mxu2  ;;  %v571_v1 = vpop.f32.mrf.mxu3 }
 0x149   : > { %v507_v2 = vadd.f32 %v1010_v53, %v506_v0 }
 0x14b   : > { %v572_v3 = vadd.f32 %v571_v1, %v507_v2 }
 0x14d   : > { %613 = vst [vmem:[%s1018_s25 + $0x18] sm:$0xff] %v572_v3 }
 0x150   : > { %v509_v4 = vpop.f32.mrf.mxu2  ;;  %v574_v5 = vpop.f32.mrf.mxu3 }
 0x151   : > { %v510_v6 = vadd.f32 %v1010_v53, %v509_v4 }
 0x153   : > { %v575_v7 = vadd.f32 %v574_v5, %v510_v6 }
 0x155   : > { %614 = vst [vmem:[%s1018_s25 + $0x20] sm:$0xff] %v575_v7 }
 0x158   : > { %v512_v8 = vpop.f32.mrf.mxu2  ;;  %v577_v9 = vpop.f32.mrf.mxu3 }
 0x159   : > { %v513_v10 = vadd.f32 %v1010_v53, %v512_v8 }
 0x15b   : > { %v578_v11 = vadd.f32 %v577_v9, %v513_v10 }
 0x15d   : > { %615 = vst [vmem:[%s1018_s25 + $0x28] sm:$0xff] %v578_v11 }
 0x160   : > { %v515_v12 = vpop.f32.mrf.mxu2  ;;  %v580_v13 = vpop.f32.mrf.mxu3 }
 0x161   : > { %v516_v14 = vadd.f32 %v1010_v53, %v515_v12 }
 0x163   : > { %v581_v15 = vadd.f32 %v580_v13, %v516_v14 }
 0x165   : > { %616 = vst [vmem:[%s1018_s25 + $0x30] sm:$0xff] %v581_v15 }
 0x168   : > { %v518_v16 = vpop.f32.mrf.mxu2  ;;  %v583_v19 = vpop.f32.mrf.mxu3 }
 0x169   : > { %v519_v20 = vadd.f32 %v1010_v53, %v518_v16 }
 0x16b   : > { %v584_v21 = vadd.f32 %v583_v19, %v519_v20 }
 0x16d   : > { %617 = vst [vmem:[%s1018_s25 + $0x38] sm:$0xff] %v584_v21 }
 0x170   : > { %v521_v22 = vpop.f32.mrf.mxu2  ;;  %v586_v23 = vpop.f32.mrf.mxu3 }
 0x171   : > { %v522_v24 = vadd.f32 %v1010_v53, %v521_v22 }
 0x173   : > { %v587_v25 = vadd.f32 %v586_v23, %v522_v24 }
 0x175   : > { %618 = vst [vmem:[%s1018_s25 + $0x40] sm:$0xff] %v587_v25 }
 0x178   : > { %v524_v26 = vpop.f32.mrf.mxu2  ;;  %v589_v27 = vpop.f32.mrf.mxu3 }
 0x179   : > { %v525_v28 = vadd.f32 %v1010_v53, %v524_v26 }
 0x17b   : > { %v590_v29 = vadd.f32 %v589_v27, %v525_v28 }
 0x17d   : > { %619 = vst [vmem:[%s1018_s25 + $0x48] sm:$0xff] %v590_v29 }
 0x180   : > { %v527_v30 = vpop.f32.mrf.mxu2  ;;  %v592_v31 = vpop.f32.mrf.mxu3 }
 0x181   : > { %v528_v32 = vadd.f32 %v1010_v53, %v527_v30 }
 0x183   : > { %v593_v33 = vadd.f32 %v592_v31, %v528_v32 }
 0x185   : > { %620 = vst [vmem:[%s1018_s25 + $0x50] sm:$0xff] %v593_v33 }
 0x188   : > { %v530_v34 = vpop.f32.mrf.mxu2  ;;  %v595_v35 = vpop.f32.mrf.mxu3 }
 0x189   : > { %v531_v36 = vadd.f32 %v1010_v53, %v530_v34 }
 0x18b   : > { %v596_v37 = vadd.f32 %v595_v35, %v531_v36 }
 0x18d   : > { %621 = vst [vmem:[%s1018_s25 + $0x58] sm:$0xff] %v596_v37 }
 0x190   : > { %v533_v38 = vpop.f32.mrf.mxu2  ;;  %v598_v39 = vpop.f32.mrf.mxu3 }
 0x191   : > { %v534_v40 = vadd.f32 %v1010_v53, %v533_v38 }
 0x193   : > { %v599_v41 = vadd.f32 %v598_v39, %v534_v40 }
 0x195   : > { %622 = vst [vmem:[%s1018_s25 + $0x60] sm:$0xff] %v599_v41 }
 0x198   : > { %v536_v42 = vpop.f32.mrf.mxu2  ;;  %v601_v43 = vpop.f32.mrf.mxu3 }
 0x199   : > { %v537_v44 = vadd.f32 %v1010_v53, %v536_v42 }
 0x19b   : > { %v602_v45 = vadd.f32 %v601_v43, %v537_v44 }
 0x19d   : > { %623 = vst [vmem:[%s1018_s25 + $0x68] sm:$0xff] %v602_v45 }
 0x1a0   : > { %v539_v46 = vpop.f32.mrf.mxu2  ;;  %v604_v47 = vpop.f32.mrf.mxu3 }
 0x1a1   : > { %v540_v48 = vadd.f32 %v1010_v53, %v539_v46 }
 0x1a3   : > { %v605_v49 = vadd.f32 %v604_v47, %v540_v48 }
 0x1a5   : > { %624 = vst [vmem:[%s1018_s25 + $0x70] sm:$0xff] %v605_v49 }
 0x1a8   : > { %v542_v50 = vpop.f32.mrf.mxu2  ;;  %v607_v51 = vpop.f32.mrf.mxu3 }
 0x1a9   : > { %v543_v52 = vadd.f32 %v1010_v53, %v542_v50 }
 0x1ab   : > { %v608_v54 = vadd.f32 %v607_v51, %v543_v52 }
 0x1ad   : > { %625 = vst [vmem:[%s1018_s25 + $0x78] sm:$0xff] %v608_v54 }
 0x1ae PF: > { %s15_s18 = sadd.s32 1, %s708_s18  }
 0x1af   : > { %p12_p4 = scmp.ge.s32.totalorder %s15_s18, 4  }
 0x1b1   :  { %14 = sbr.rel (!%p12_p4) target bundleno = 1 (0x1), region = 70 }

</bundles_post_ra>
